<compile_context>
chip_gen: v5e
topology: v5e:2x2
jax: 0.10.0
libtpu: 0.0.40
codegen_flags: <defaults>
</compile_context>

<pallas_src>
import functools

import jax
import jax.numpy as jnp
import numpy as np
from jax.experimental import pallas as pl
from jax.experimental.pallas import tpu as pltpu


# ---------------------------------------------------------------------------
# Kernel: one batch tile (Bt) per grid step.
# ---------------------------------------------------------------------------
def attention_kernel(enc_ref, dec_ref, we_ref, be_ref, wd_ref, bd_ref,
                     wf_ref, bf_ref, awe_ref, alpha_ref, *, num_pixels):
    Bt, P_pad, E_pad = enc_ref.shape
    A_pad = we_ref.shape[1]

    enc = enc_ref[...]                                      # (Bt, P_pad, E_pad)
    dec = dec_ref[...]                                      # (Bt, D_pad)

    # encoder_att: flatten to one big MXU matmul (Bt*P, E) @ (E, A).
    enc2d = enc.reshape(Bt * P_pad, E_pad)
    att1 = jnp.dot(enc2d, we_ref[...],
                   preferred_element_type=jnp.float32) + be_ref[...]    # (Bt*P, A)
    att1 = att1.reshape(Bt, P_pad, A_pad)

    # decoder_att: one batched (Bt, D) @ (D, A) matmul per tile.
    att2 = jnp.dot(dec, wd_ref[...],
                   preferred_element_type=jnp.float32) + bd_ref[...]    # (Bt, A)

    # relu(att1 + att2.unsqueeze(1))
    h = jnp.maximum(att1 + att2[:, None, :], 0.0)           # (Bt, P, A) f32

    # full_att: contract A on the lane axis -> att stays lane-dense as (Bt, P).
    wf_row = wf_ref[...].astype(jnp.float32)                # (1, A_pad)
    att = jnp.sum(h * wf_row[None, :, :], axis=-1)          # (Bt, P)
    att = att + bf_ref[0, 0]                                # scalar bias from SMEM

    # Mask zero-padded pixel positions out of the softmax.
    if num_pixels != P_pad:
        pix = jax.lax.broadcasted_iota(jnp.int32, (Bt, P_pad), 1)
        att = jnp.where(pix < num_pixels, att, -1e30)

    # Softmax over the pixel (lane) axis, f32.
    m = jnp.max(att, axis=1, keepdims=True)
    e = jnp.exp(att - m)
    alpha = e / jnp.sum(e, axis=1, keepdims=True)           # (Bt, P)

    # attention_weighted_encoding via the MXU: (Bt,1,P) @ (Bt,P,E) -> (Bt,1,E).
    awe = jnp.einsum('bqp,bpe->bqe',
                     alpha[:, None, :].astype(enc.dtype), enc,
                     preferred_element_type=jnp.float32)[:, 0, :]        # (Bt, E)

    awe_ref[...] = awe.astype(awe_ref.dtype)
    alpha_ref[...] = alpha.astype(alpha_ref.dtype)


# ---------------------------------------------------------------------------
# Wrapper
# ---------------------------------------------------------------------------
def _pad_to(x, axis, multiple):
    size = x.shape[axis]
    pad = (-size) % multiple
    if pad == 0:
        return x
    widths = [(0, 0)] * x.ndim
    widths[axis] = (0, pad)
    return jnp.pad(x, widths)


def _pick_batch_tile(B, P_pad, E_pad, D_pad, A_pad, compute_itemsize,
                     vmem_budget_bytes=32 * 1024 * 1024):
    """Pick a batch tile that fits a conservative VMEM budget (v5e/v6e/v7x safe)."""
    weights = 2 * (E_pad * A_pad + D_pad * A_pad + 3 * A_pad) * 4
    per_b = 2 * (P_pad * E_pad + D_pad) * compute_itemsize          # double-buffered inputs
    per_b += (P_pad * A_pad + 2 * P_pad + 2 * E_pad) * 4            # f32 intermediates/outs
    bt = max(1, (vmem_budget_bytes - weights) // per_b)
    bt = int(min(bt, 32, B))
    if bt < B:                                  # keep the batch sublane axis 8-aligned
        bt = max(8, (bt // 8) * 8)
    return bt


def attention_pallas(encoder_out, decoder_hidden, params,
                     compute_dtype=jnp.float32):
    B, P, E = encoder_out.shape
    D = decoder_hidden.shape[1]
    A = params["w_enc"].shape[1]

    LANE, SUB = 128, 8
    P_pad = ((P + SUB - 1) // SUB) * SUB
    E_pad = ((E + LANE - 1) // LANE) * LANE
    A_pad = ((A + LANE - 1) // LANE) * LANE
    D_pad = ((D + LANE - 1) // LANE) * LANE

    # Zero-pad data and weights once (zeros contribute nothing to the matmuls;
    # padded pixels are masked before the softmax inside the kernel).
    enc = _pad_to(_pad_to(encoder_out, 2, LANE), 1, SUB)            # (B, P_pad, E_pad)
    dec = _pad_to(decoder_hidden, 1, LANE)                          # (B, D_pad)
    we = _pad_to(_pad_to(params["w_enc"], 0, LANE), 1, LANE)        # (E_pad, A_pad)
    be = _pad_to(params["b_enc"], 1, LANE)                          # (1, A_pad)
    wd = _pad_to(_pad_to(params["w_dec"], 0, LANE), 1, LANE)        # (D_pad, A_pad)
    bd = _pad_to(params["b_dec"], 1, LANE)                          # (1, A_pad)
    wf = _pad_to(params["w_full"].T, 1, LANE)                       # (1, A_pad), lane-dense
    bf = params["b_full"].reshape(1, 1).astype(jnp.float32)         # scalar -> SMEM

    itemsize = jnp.dtype(compute_dtype).itemsize
    Bt = _pick_batch_tile(B, P_pad, E_pad, D_pad, A_pad, itemsize)
    B_pad = ((B + Bt - 1) // Bt) * Bt
    if B_pad != B:
        enc = jnp.pad(enc, ((0, B_pad - B), (0, 0), (0, 0)))
        dec = jnp.pad(dec, ((0, B_pad - B), (0, 0)))

    # bf16 (optional) feeds the MXU at full rate; accumulation stays f32.
    enc = enc.astype(compute_dtype)
    dec = dec.astype(compute_dtype)
    we = we.astype(compute_dtype)
    wd = wd.astype(compute_dtype)
    be = be.astype(jnp.float32)
    bd = bd.astype(jnp.float32)
    wf = wf.astype(jnp.float32)

    kernel = functools.partial(attention_kernel, num_pixels=P)

    grid_spec = pltpu.PrefetchScalarGridSpec(
        num_scalar_prefetch=0,
        grid=(B_pad // Bt,),
        in_specs=[
            pl.BlockSpec((Bt, P_pad, E_pad), lambda b: (b, 0, 0)),   # encoder_out tile
            pl.BlockSpec((Bt, D_pad),        lambda b: (b, 0)),      # decoder_hidden tile
            pl.BlockSpec((E_pad, A_pad),     lambda b: (0, 0)),      # w_enc
            pl.BlockSpec((1, A_pad),         lambda b: (0, 0)),      # b_enc
            pl.BlockSpec((D_pad, A_pad),     lambda b: (0, 0)),      # w_dec
            pl.BlockSpec((1, A_pad),         lambda b: (0, 0)),      # b_dec
            pl.BlockSpec((1, A_pad),         lambda b: (0, 0)),      # w_full (transposed)
            pl.BlockSpec(memory_space=pltpu.MemorySpace.SMEM),       # b_full scalar
        ],
        out_specs=[
            pl.BlockSpec((Bt, E_pad), lambda b: (b, 0)),             # awe
            pl.BlockSpec((Bt, P_pad), lambda b: (b, 0)),             # alpha
        ],
    )

    awe, alpha = pl.pallas_call(
        kernel,
        out_shape=(
            jax.ShapeDtypeStruct((B_pad, E_pad), jnp.float32),
            jax.ShapeDtypeStruct((B_pad, P_pad), jnp.float32),
        ),
        grid_spec=grid_spec,
        compiler_params=pltpu.CompilerParams(
            dimension_semantics=("parallel",),       # batch tiles are independent
            vmem_limit_bytes=48 * 1024 * 1024,       # above all scoped defaults, < v7x phys
        ),
    )(enc, dec, we, be, wd, bd, wf, bf)

    return awe[:B, :E], alpha[:B, :P]


# ---------------------------------------------------------------------------
# Pure-JAX reference mirroring the PyTorch forward.
# ---------------------------------------------------------------------------
def attention_ref(encoder_out, decoder_hidden, params):
    att1 = encoder_out @ params["w_enc"] + params["b_enc"][0]            # (B, P, A)
    att2 = decoder_hidden @ params["w_dec"] + params["b_dec"][0]         # (B, A)
    h = jnp.maximum(att1 + att2[:, None, :], 0.0)                        # (B, P, A)
    att = (h @ params["w_full"])[..., 0] + params["b_full"][0, 0]        # (B, P)
    alpha = jax.nn.softmax(att, axis=1)                                  # (B, P)
    awe = (encoder_out * alpha[:, :, None]).sum(axis=1)                  # (B, E)
    return awe, alpha


def init_params(key, encoder_dim, decoder_dim, attention_dim):
    ks = jax.random.split(key, 6)

    def lin(kw, kb, fan_in, fan_out):
        bound = 1.0 / np.sqrt(fan_in)
        w = jax.random.uniform(kw, (fan_in, fan_out), jnp.float32, -bound, bound)
        b = jax.random.uniform(kb, (1, fan_out), jnp.float32, -bound, bound)
        return w, b

    w_enc, b_enc = lin(ks[0], ks[1], encoder_dim, attention_dim)
    w_dec, b_dec = lin(ks[2], ks[3], decoder_dim, attention_dim)
    w_full, b_full = lin(ks[4], ks[5], attention_dim, 1)
    return {"w_enc": w_enc, "b_enc": b_enc,
            "w_dec": w_dec, "b_dec": b_dec,
            "w_full": w_full, "b_full": b_full}


if __name__ == "__main__":
    B, P = 2, 8                     # batch, num_pixels
    encoder_dim, decoder_dim, attention_dim = 32, 16, 32

    key = jax.random.PRNGKey(0)
    k_enc, k_dec, k_par = jax.random.split(key, 3)
    encoder_out = jax.random.normal(k_enc, (B, P, encoder_dim), jnp.float32)
    decoder_hidden = jax.random.normal(k_dec, (B, decoder_dim), jnp.float32)
    params = init_params(k_par, encoder_dim, decoder_dim, attention_dim)

    awe_ref, alpha_ref = attention_ref(encoder_out, decoder_hidden, params)

    # f32 compute path: strict check.
    awe, alpha = attention_pallas(encoder_out, decoder_hidden, params)
    jax.block_until_ready((awe, alpha))
    assert np.allclose(np.asarray(awe), np.asarray(awe_ref), atol=1e-5, rtol=1e-5)
    assert np.allclose(np.asarray(alpha), np.asarray(alpha_ref), atol=1e-5, rtol=1e-5)

    # bf16 matmul path (production setting): loose check.
    awe_bf, alpha_bf = attention_pallas(encoder_out, decoder_hidden, params,
                                        compute_dtype=jnp.bfloat16)
    jax.block_until_ready((awe_bf, alpha_bf))
    assert np.allclose(np.asarray(awe_bf), np.asarray(awe_ref), atol=5e-2, rtol=5e-2)
    assert np.allclose(np.asarray(alpha_bf), np.asarray(alpha_ref), atol=5e-2, rtol=5e-2)

    print("KERNEL_OK")
</pallas_src>

<mosaic_0001>
module attributes {stable_mosaic.version = 11 : i64} {
  func.func @attention_kernel(%arg0: i32, %arg1: memref<2x8x128xf32, #tpu.memory_space<vmem>>, %arg2: memref<2x128xf32, #tpu.memory_space<vmem>>, %arg3: memref<128x128xf32, #tpu.memory_space<vmem>>, %arg4: memref<1x128xf32, #tpu.memory_space<vmem>>, %arg5: memref<128x128xf32, #tpu.memory_space<vmem>>, %arg6: memref<1x128xf32, #tpu.memory_space<vmem>>, %arg7: memref<1x128xf32, #tpu.memory_space<vmem>>, %arg8: memref<1x1xf32, #tpu.memory_space<smem>>, %arg9: memref<2x128xf32, #tpu.memory_space<vmem>>, %arg10: memref<2x8xf32, #tpu.memory_space<vmem>>) attributes {dimension_semantics = [#tpu.dimension_semantics<parallel>], iteration_bounds = array<i64: 1>, scalar_prefetch = 0 : i64, scratch_operands = 0 : i64, tpu.core_type = #tpu.core_type<tc>, window_params = [{transform_indices = @transform_0, window_bounds = array<i64: 2, 8, 128>}, {transform_indices = @transform_1, window_bounds = array<i64: 2, 128>}, {pipeline_mode = #tpu.pipeline_mode<synchronous>, transform_indices = @transform_2, window_bounds = array<i64: 128, 128>}, {pipeline_mode = #tpu.pipeline_mode<synchronous>, transform_indices = @transform_3, window_bounds = array<i64: 1, 128>}, {pipeline_mode = #tpu.pipeline_mode<synchronous>, transform_indices = @transform_4, window_bounds = array<i64: 128, 128>}, {pipeline_mode = #tpu.pipeline_mode<synchronous>, transform_indices = @transform_5, window_bounds = array<i64: 1, 128>}, {pipeline_mode = #tpu.pipeline_mode<synchronous>, transform_indices = @transform_6, window_bounds = array<i64: 1, 128>}, {transform_indices = @transform_7, window_bounds = array<i64: 1, 1>}, {transform_indices = @transform_8, window_bounds = array<i64: 2, 128>}, {transform_indices = @transform_9, window_bounds = array<i64: 2, 8>}]} {
    %c0 = arith.constant 0 : index
    %c0_0 = arith.constant 0 : index
    %c0_1 = arith.constant 0 : index
    %0 = vector.load %arg1[%c0, %c0_0, %c0_1] : memref<2x8x128xf32, #tpu.memory_space<vmem>>, vector<2x8x128xf32>
    %c0_2 = arith.constant 0 : index
    %c0_3 = arith.constant 0 : index
    %1 = vector.load %arg2[%c0_2, %c0_3] : memref<2x128xf32, #tpu.memory_space<vmem>>, vector<2x128xf32>
    %2 = vector.shape_cast %0 : vector<2x8x128xf32> to vector<16x128xf32>
    %c0_4 = arith.constant 0 : index
    %c0_5 = arith.constant 0 : index
    %3 = vector.load %arg3[%c0_4, %c0_5] : memref<128x128xf32, #tpu.memory_space<vmem>>, vector<128x128xf32>
    %cst = arith.constant dense<0.000000e+00> : vector<16x128xf32>
    %4 = tpu.matmul %2, %3, %cst {dimension_numbers = #tpu.dot_dimension_numbers<[1], [0], [0], [1], [0, 0, 1, 1], [], []>} : vector<16x128xf32>, vector<128x128xf32>, vector<16x128xf32> -> vector<16x128xf32>
    %c0_6 = arith.constant 0 : index
    %c0_7 = arith.constant 0 : index
    %5 = vector.load %arg4[%c0_6, %c0_7] : memref<1x128xf32, #tpu.memory_space<vmem>>, vector<1x128xf32>
    %6 = vector.broadcast %5 : vector<1x128xf32> to vector<16x128xf32>
    %7 = arith.addf %4, %6 : vector<16x128xf32>
    %8 = vector.shape_cast %7 : vector<16x128xf32> to vector<2x8x128xf32>
    %c0_8 = arith.constant 0 : index
    %c0_9 = arith.constant 0 : index
    %9 = vector.load %arg5[%c0_8, %c0_9] : memref<128x128xf32, #tpu.memory_space<vmem>>, vector<128x128xf32>
    %cst_10 = arith.constant dense<0.000000e+00> : vector<2x128xf32>
    %10 = tpu.matmul %1, %9, %cst_10 {dimension_numbers = #tpu.dot_dimension_numbers<[1], [0], [0], [1], [0, 0, 1, 1], [], []>} : vector<2x128xf32>, vector<128x128xf32>, vector<2x128xf32> -> vector<2x128xf32>
    %c0_11 = arith.constant 0 : index
    %c0_12 = arith.constant 0 : index
    %11 = vector.load %arg6[%c0_11, %c0_12] : memref<1x128xf32, #tpu.memory_space<vmem>>, vector<1x128xf32>
    %12 = vector.broadcast %11 : vector<1x128xf32> to vector<2x128xf32>
    %13 = arith.addf %10, %12 : vector<2x128xf32>
    %14 = vector.shape_cast %13 : vector<2x128xf32> to vector<2x1x128xf32>
    %15 = vector.broadcast %14 : vector<2x1x128xf32> to vector<2x8x128xf32>
    %16 = arith.addf %8, %15 : vector<2x8x128xf32>
    %cst_13 = arith.constant 0.000000e+00 : f32
    %17 = vector.broadcast %cst_13 : f32 to vector<2x8x128xf32>
    %18 = arith.maximumf %16, %17 : vector<2x8x128xf32>
    %c0_14 = arith.constant 0 : index
    %c0_15 = arith.constant 0 : index
    %19 = vector.load %arg7[%c0_14, %c0_15] : memref<1x128xf32, #tpu.memory_space<vmem>>, vector<1x128xf32>
    %20 = vector.shape_cast %19 : vector<1x128xf32> to vector<1x1x128xf32>
    %21 = vector.broadcast %20 : vector<1x1x128xf32> to vector<2x8x128xf32>
    %22 = arith.mulf %18, %21 : vector<2x8x128xf32>
    %cst_16 = arith.constant dense<0.000000e+00> : vector<2x8xf32>
    %23 = vector.multi_reduction <add>, %22, %cst_16 [2] : vector<2x8x128xf32> to vector<2x8xf32>
    %c0_17 = arith.constant 0 : index
    %c0_18 = arith.constant 0 : index
    %24 = memref.load %arg8[%c0_17, %c0_18] : memref<1x1xf32, #tpu.memory_space<smem>>
    %25 = vector.broadcast %24 : f32 to vector<2x8xf32>
    %26 = arith.addf %23, %25 : vector<2x8xf32>
    %cst_19 = arith.constant dense<0xFF800000> : vector<2xf32>
    %27 = vector.multi_reduction <maximumf>, %26, %cst_19 [1] : vector<2x8xf32> to vector<2xf32>
    %28 = vector.shape_cast %27 : vector<2xf32> to vector<2x1xf32>
    %29 = vector.broadcast %28 : vector<2x1xf32> to vector<2x8xf32>
    %30 = arith.subf %26, %29 : vector<2x8xf32>
    %31 = math.exp %30 : vector<2x8xf32>
    %cst_20 = arith.constant dense<0.000000e+00> : vector<2xf32>
    %32 = vector.multi_reduction <add>, %31, %cst_20 [1] : vector<2x8xf32> to vector<2xf32>
    %33 = vector.shape_cast %32 : vector<2xf32> to vector<2x1xf32>
    %34 = vector.broadcast %33 : vector<2x1xf32> to vector<2x8xf32>
    %35 = arith.divf %31, %34 : vector<2x8xf32>
    %36 = vector.shape_cast %35 : vector<2x8xf32> to vector<2x1x8xf32>
    "tpu.trace_start"() <{level = 10 : i32, message = "bqp,bpe->bqe"}> : () -> ()
    %cst_21 = arith.constant dense<0.000000e+00> : vector<2x1x128xf32>
    %37 = tpu.matmul %36, %0, %cst_21 {dimension_numbers = #tpu.dot_dimension_numbers<[2], [1], [1], [2], [0, 0, 0, 1, 1, 2], [0], [0]>} : vector<2x1x8xf32>, vector<2x8x128xf32>, vector<2x1x128xf32> -> vector<2x1x128xf32>
    "tpu.trace_stop"() : () -> ()
    %38 = vector.shape_cast %37 : vector<2x1x128xf32> to vector<2x128xf32>
    %c0_22 = arith.constant 0 : index
    %c0_23 = arith.constant 0 : index
    %39 = vector.load %arg9[%c0_22, %c0_23] : memref<2x128xf32, #tpu.memory_space<vmem>>, vector<2x128xf32>
    tpu.vector_store %arg9[%c0_22, %c0_23], %38 {strides = array<i32>} : memref<2x128xf32, #tpu.memory_space<vmem>>, vector<2x128xf32>,
    %c0_24 = arith.constant 0 : index
    %c0_25 = arith.constant 0 : index
    %40 = vector.load %arg10[%c0_24, %c0_25] : memref<2x8xf32, #tpu.memory_space<vmem>>, vector<2x8xf32>
    tpu.vector_store %arg10[%c0_24, %c0_25], %35 {strides = array<i32>} : memref<2x8xf32, #tpu.memory_space<vmem>>, vector<2x8xf32>,
    return
  }
  func.func @transform_0(%arg0: i32) -> (i32, i32, i32) {
    %c0_i32 = arith.constant 0 : i32
    %c0_i32_0 = arith.constant 0 : i32
    %c0_i32_1 = arith.constant 0 : i32
    return %arg0, %c0_i32, %c0_i32_0 : i32, i32, i32
  }
  func.func @transform_1(%arg0: i32) -> (i32, i32) {
    %c0_i32 = arith.constant 0 : i32
    %c0_i32_0 = arith.constant 0 : i32
    return %arg0, %c0_i32 : i32, i32
  }
  func.func @transform_2(%arg0: i32) -> (i32, i32) {
    %c0_i32 = arith.constant 0 : i32
    %c0_i32_0 = arith.constant 0 : i32
    %c0_i32_1 = arith.constant 0 : i32
    return %c0_i32, %c0_i32_0 : i32, i32
  }
  func.func @transform_3(%arg0: i32) -> (i32, i32) {
    %c0_i32 = arith.constant 0 : i32
    %c0_i32_0 = arith.constant 0 : i32
    %c0_i32_1 = arith.constant 0 : i32
    return %c0_i32, %c0_i32_0 : i32, i32
  }
  func.func @transform_4(%arg0: i32) -> (i32, i32) {
    %c0_i32 = arith.constant 0 : i32
    %c0_i32_0 = arith.constant 0 : i32
    %c0_i32_1 = arith.constant 0 : i32
    return %c0_i32, %c0_i32_0 : i32, i32
  }
  func.func @transform_5(%arg0: i32) -> (i32, i32) {
    %c0_i32 = arith.constant 0 : i32
    %c0_i32_0 = arith.constant 0 : i32
    %c0_i32_1 = arith.constant 0 : i32
    return %c0_i32, %c0_i32_0 : i32, i32
  }
  func.func @transform_6(%arg0: i32) -> (i32, i32) {
    %c0_i32 = arith.constant 0 : i32
    %c0_i32_0 = arith.constant 0 : i32
    %c0_i32_1 = arith.constant 0 : i32
    return %c0_i32, %c0_i32_0 : i32, i32
  }
  func.func @transform_7(%arg0: i32) -> (i32, i32) {
    %c0_i32 = arith.constant 0 : i32
    %c0_i32_0 = arith.constant 0 : i32
    %c0_i32_1 = arith.constant 0 : i32
    return %c0_i32, %c0_i32_0 : i32, i32
  }
  func.func @transform_8(%arg0: i32) -> (i32, i32) {
    %c0_i32 = arith.constant 0 : i32
    %c0_i32_0 = arith.constant 0 : i32
    return %arg0, %c0_i32 : i32, i32
  }
  func.func @transform_9(%arg0: i32) -> (i32, i32) {
    %c0_i32 = arith.constant 0 : i32
    %c0_i32_0 = arith.constant 0 : i32
    return %arg0, %c0_i32 : i32, i32
  }
}

</mosaic_0001>

<bundles_post_ra>
// kernel: tpu_custom_call.1
= control target key start
LH: loop header
LB: loop body
LE: loop exit
PB: predicated region body
PF: predicated region fallthrough
CT: control target
= control target key end

     0   :  { %16 = vsyncpa [#allocation4], 0  ;;  %s618_s0 = inlined_call_operand.hbm [shape: f32[2,8,128], index: 0, kind: input, shape index: {}]   ;;  %s619_s1 = inlined_call_operand.vmem [shape: f32[2,128], index: 1, kind: input, shape index: {}]   ;;  %s620_s2 = inlined_call_operand.hbm [shape: f32[128,128], index: 2, kind: input, shape index: {}]   ;;  %s621_s3 = inlined_call_operand.vmem [shape: f32[1,128], index: 3, kind: input, shape index: {}]   ;;  %s622_s4 = inlined_call_operand.hbm [shape: f32[128,128], index: 4, kind: input, shape index: {}]   ;;  %s623_s5 = inlined_call_operand.vmem [shape: f32[1,128], index: 5, kind: input, shape index: {}]   ;;  %s624_s6 = inlined_call_operand.vmem [shape: f32[1,128], index: 6, kind: input, shape index: {}]   ;;  %s625_s7 = inlined_call_operand.<no memory space> [shape: f32[1,1], index: 7, kind: input, shape index: {}]   ;;  %s626_s8 = inlined_call_operand.hbm [shape: f32[2,128], index: 8, kind: output, shape index: {0}]   ;;  %s627_s9 = inlined_call_operand.hbm [shape: f32[2,8], index: 9, kind: output, shape index: {1}]  }
   0x1   :  { %17 = vsyncpa [#allocation7], 0 }
   0x2   :  { %18 = vsyncpa [#allocation5], 0 }
   0x3   :  { %19 = vsyncpa [#allocation11], 0  ;;  %s39_s11 = sshll.u32 %s620_s2, 4  ;;  %s515_s12 = smov [#allocation6]   ;;  %s40_s11 = int_to_ptr.hbm [resolvable:$true] %s39_s11 }
   0x4   :  { %s41_s13 = sshll.u32 %s515_s12, 4  ;;  %s24_s16 = sshll.u32 %s618_s0, 4  ;;  %s42_s13 = int_to_ptr.vmem [resolvable:$true] %s41_s13  ;;  %s25_s16 = int_to_ptr.hbm [resolvable:$true] %s24_s16 }
   0x5   :  { %s516_s17 = smov 128   ;;  %s517_s18 = smov 8  }
   0x6   :  { %47 = dma.hbm_to_vmem [thread:$0]  %s40_s11, 2048, %s42_s13, [#allocation7], %s516_s17, %s516_s17, %s517_s18  }
   0x7   :  { %s518_s19 = smov [#allocation3]   ;;  %s54_s23 = sshll.u32 %s622_s4, 4  ;;  %s55_s23 = int_to_ptr.hbm [resolvable:$true] %s54_s23 }
   0x8   :  { %s26_s20 = sshll.u32 %s518_s19, 4  ;;  %s519_s2 = smov [#allocation8]   ;;  %s27_s20 = int_to_ptr.vmem [resolvable:$true] %s26_s20 }
   0x9   :  { %32 = dma.hbm_to_vmem [thread:$0]  %s25_s16, 256, %s27_s20, [#allocation4], %s516_s17, %s516_s17, %s517_s18  }
   0xa   :  { %s56_s24 = sshll.u32 %s519_s2, 4  ;;  %s57_s24 = int_to_ptr.vmem [resolvable:$true] %s56_s24 }
   0xb   :  { %62 = dma.hbm_to_vmem [thread:$0]  %s55_s23, 2048, %s57_s24, [#allocation7], %s516_s17, %s516_s17, %s517_s18  }
   0xc   :  { %507 = dma.done.wait [#allocation4], 256  }
   0xd   :  { %508 = vsyncadd [#allocation4], 4294967040 }
   0xe   :  { %509 = dma.done.wait [#allocation7], 4096  }
   0xf   :  { %510 = vsyncadd [#allocation7], 4294963200  ;;  %v99_v0 = vld [vmem:[#allocation6 + $0x78] sm:$0xff]  ;;  %v98_v2 = vld [vmem:[#allocation6 + $0x70] sm:$0xff]  ;;  %v193_v54 = vlaneseq  ;;  %v188_v55 = vstv %s625_s7  ;;  %vm197_vm0 = vcmask 1041409   ;;  %vm200_vm1 = vcmask 58368  }
  0x10   :  { %v142_v1 = vld [vmem:[#allocation8 + $0x78] sm:$0xff]  ;;  %104 = vmatpush.msra.mxu0 %v99_v0  ;;  %v141_v3 = vld [vmem:[#allocation8 + $0x70] sm:$0xff]  ;;  %v97_v4 = vld [vmem:[#allocation6 + $0x68] sm:$0xff]  ;;  %v520_v0 = vmov 0   ;;  %vm270_vm10 = vcmask 64512   ;;  %s347_s11 = sshll.u32 %s627_s9, 4  ;;  %s348_s11 = int_to_ptr.hbm [resolvable:$true] %s347_s11 }
  0x11   :  { %147 = vmatpush.msra.mxu1 %v142_v1  ;;  %v140_v5 = vld [vmem:[#allocation8 + $0x68] sm:$0xff]  ;;  %v96_v6 = vld [vmem:[#allocation6 + $0x60] sm:$0xff]  ;;  %v95_v8 = vld [vmem:[#allocation6 + $0x58] sm:$0xff]  ;;  %v597_v56 = vand.u32 127, %v193_v54  ;;  %374 = vset.pattern.permute.xlu2 %v520_v0  ;;  %s522_s12 = smov [#allocation9]   ;;  %s336_s16 = sshll.u32 %s626_s8, 4  ;;  %s337_s16 = int_to_ptr.hbm [resolvable:$true] %s336_s16 }
  0x12   :  { %105 = vmatpush.msra.mxu0 %v98_v2  ;;  %v139_v7 = vld [vmem:[#allocation8 + $0x60] sm:$0xff]  ;;  %v138_v9 = vld [vmem:[#allocation8 + $0x58] sm:$0xff]  ;;  %v94_v10 = vld [vmem:[#allocation6 + $0x50] sm:$0xff]  ;;  %373 = vset.pattern.permute.xlu1 %v520_v0  ;;  %s334_s13 = sshll.u32 %s522_s12, 4  ;;  %s335_s13 = int_to_ptr.vmem [resolvable:$true] %s334_s13 }
  0x13   :  { %148 = vmatpush.msra.mxu1 %v141_v3  ;;  %v137_v11 = vld [vmem:[#allocation8 + $0x50] sm:$0xff]  ;;  %v93_v12 = vld [vmem:[#allocation6 + $0x48] sm:$0xff]  ;;  %v92_v14 = vld [vmem:[#allocation6 + $0x40] sm:$0xff]  ;;  %375 = vset.pattern.permute.xlu0 %v520_v0 }
  0x14   :  { %106 = vmatpush.msra.mxu0 %v97_v4  ;;  %v136_v13 = vld [vmem:[#allocation8 + $0x48] sm:$0xff]  ;;  %v81_v15 = vld [vmem:[#allocation3] sm:$0xff]  ;;  %v82_v16 = vld [vmem:[#allocation3 + $0x8] sm:$0xff] }
  0x15   :  { %149 = vmatpush.msra.mxu1 %v140_v5  ;;  %v135_v17 = vld [vmem:[#allocation8 + $0x40] sm:$0xff]  ;;  %288 = vmatpush.msra.mxu2 %v81_v15  ;;  %v91_v18 = vld [vmem:[#allocation6 + $0x38] sm:$0xff]  ;;  %v90_v20 = vld [vmem:[#allocation6 + $0x30] sm:$0xff] }
  0x16   :  { %107 = vmatpush.msra.mxu0 %v96_v6  ;;  %315 = vmatpush.msra.mxu3 %v82_v16  ;;  %v134_v19 = vld [vmem:[#allocation8 + $0x38] sm:$0xff]  ;;  %v133_v21 = vld [vmem:[#allocation8 + $0x30] sm:$0xff]  ;;  %v89_v22 = vld [vmem:[#allocation6 + $0x28] sm:$0xff] }
  0x17   :  { %150 = vmatpush.msra.mxu1 %v139_v7  ;;  %v132_v23 = vld [vmem:[#allocation8 + $0x28] sm:$0xff]  ;;  %v88_v24 = vld [vmem:[#allocation6 + $0x20] sm:$0xff]  ;;  %v87_v26 = vld [vmem:[#allocation6 + $0x18] sm:$0xff] }
  0x18   :  { %108 = vmatpush.msra.mxu0 %v95_v8  ;;  %v131_v25 = vld [vmem:[#allocation8 + $0x20] sm:$0xff]  ;;  %v130_v27 = vld [vmem:[#allocation8 + $0x18] sm:$0xff]  ;;  %v86_v28 = vld [vmem:[#allocation6 + $0x10] sm:$0xff] }
  0x19   :  { %151 = vmatpush.msra.mxu1 %v138_v9  ;;  %v129_v29 = vld [vmem:[#allocation8 + $0x10] sm:$0xff]  ;;  %v85_v30 = vld [vmem:[#allocation6 + $0x8] sm:$0xff]  ;;  %v84_v32 = vld [vmem:[#allocation6] sm:$0xff] }
  0x1a   :  { %109 = vmatpush.msra.mxu0 %v94_v10  ;;  %v128_v31 = vld [vmem:[#allocation8 + $0x8] sm:$0xff]  ;;  %v127_v33 = vld [vmem:[#allocation8] sm:$0xff]  ;;  %v83_v34 = vld [vmem:[%s619_s1] sm:$0x3] }
  0x1b   :  { %152 = vmatpush.msra.mxu1 %v137_v11  ;;  %v376_v35 = vld [vmem:[%s621_s3] ss:$0 sm:$0xff] }
  0x1c   :  { %110 = vmatpush.msra.mxu0 %v93_v12  ;;  %v377_v36 = vld [vmem:[%s623_s5] ss:$0 sm:$0xff] }
  0x1d   :  { %153 = vmatpush.msra.mxu1 %v136_v13  ;;  %v378_v44 = vld [vmem:[%s624_s6] ss:$0 sm:$0xff]  ;;  %s521_s6 = smov [#allocation10]  }
  0x1e   :  { %111 = vmatpush.msra.mxu0 %v92_v14  ;;  %s345_s7 = sshll.u32 %s521_s6, 4  ;;  %s346_s7 = int_to_ptr.vmem [resolvable:$true] %s345_s7 }
  0x1f   :  { %154 = vmatpush.msra.mxu1 %v135_v17 }
  0x20   :  { %112 = vmatpush.msra.mxu0 %v91_v18 }
  0x21   :  { %155 = vmatpush.msra.mxu1 %v134_v19 }
  0x22   :  { %113 = vmatpush.msra.mxu0 %v90_v20 }
  0x23   :  { %156 = vmatpush.msra.mxu1 %v133_v21 }
  0x24   :  { %114 = vmatpush.msra.mxu0 %v89_v22 }
  0x25   :  { %157 = vmatpush.msra.mxu1 %v132_v23 }
  0x26   :  { %115 = vmatpush.msra.mxu0 %v88_v24 }
  0x27   :  { %158 = vmatpush.msra.mxu1 %v131_v25 }
  0x28   :  { %116 = vmatpush.msra.mxu0 %v87_v26 }
  0x29   :  { %159 = vmatpush.msra.mxu1 %v130_v27 }
  0x2a   :  { %117 = vmatpush.msra.mxu0 %v86_v28 }
  0x2b   :  { %160 = vmatpush.msra.mxu1 %v129_v29 }
  0x2c   :  { %118 = vmatpush.msra.mxu0 %v85_v30 }
  0x2d   :  { %161 = vmatpush.msra.mxu1 %v128_v31 }
  0x2e   :  { %119 = vmatpush.msra.mxu0 %v84_v32 }
  0x2f   :  { %162 = vmatpush.msra.mxu1 %v127_v33  ;;  %120 = vmatmul.f32.vlgmr.msra.gmra.mxu0 %v81_v15 }
  0x30   :  { %163 = vmatmul.f32.vlgmr.msra.gmra.mxu1 %v83_v34 }
  0x37   :  { %123 = vmatmul.f32.gmra.mxu0 %v82_v16 }
  0xac   :  { %v121_v37 = vpop.f32.mrf.mxu0 }
  0xad   :  { %v164_v38 = vpop.f32.mrf.mxu1  ;;  %v122_v39 = vadd.f32 %v376_v35, %v121_v37 }
  0xae   :  { %v165_v40 = vadd.f32 %v377_v36, %v164_v38 }
  0xb0   :  { %v169_v41 = vperm.slane %v165_v40, 0  ;;  %v168_v42 = vrot.slane %v165_v40, 1 }
  0xb2   :  { %v173_v43 = vadd.f32 %v169_v41, %v122_v39  ;;  %v170_v47 = vperm.slane %v168_v42, 0 }
  0xb4   :  { %v175_v45 = vmax.f32 %v173_v43, 0.0  ;;  %v124_v46 = vpop.f32.mrf.mxu0 }
  0xb5   :  { %v125_v48 = vadd.f32 %v376_v35, %v124_v46 }
  0xb6   :  { %v181_v49 = vmul.f32 %v378_v44, %v175_v45 }
  0xb7   :  { %v174_v50 = vadd.f32 %v170_v47, %v125_v48 }
  0xb8   :  { %183 = vadd.xlane.f32.xlu0 %v181_v49 }
  0xb9   :  { %v176_v51 = vmax.f32 %v174_v50, 0.0 }
  0xbb   :  { %v182_v52 = vmul.f32 %v378_v44, %v176_v51 }
  0xc0   :  { %185 = vadd.xlane.f32.xlu0 %v182_v52 }
 0x12b   :  { %v184_v53 = vpop.xlane.xlu0 %183 }
 0x12c   :  { %v189_v57 = vadd.f32 %v188_v55, %v184_v53 }
 0x12e   :  { %v195_v60 = vperm.slane %v189_v57, %v597_v56 }
 0x133   :  { %v186_v58 = vpop.xlane.xlu0 %185 }
 0x134   :  { %v190_v59 = vadd.f32 %v188_v55, %v186_v58 }
 0x136   :  { %v196_v61 = vperm.slane %v190_v59, %v597_v56 }
 0x138   :  { %v198_v62 = vsel %vm197_vm0, %v196_v61, %v195_v60 }
 0x139   :  { %v201_v63 = vsel %vm200_vm1, %v198_v62, -inf }
 0x13a   :  { %202 = vmax.xlane.f32.xlu1 %v201_v63 }
 0x1ad   :  { %v203_v1 = vpop.xlane.xlu1 %202 }
 0x1ae   :  { %v205_v2 = vperm.slane %v203_v1, 0  ;;  %v206_v3 = vperm.slane %v203_v1, 1 }
 0x1b0   :  { %v209_v4 = vsub.f32 %v189_v57, %v205_v2  ;;  %v210_v5 = vsub.f32 %v190_v59, %v206_v3 }
 0x1b2   :  { %v211_v6 = vmul.f32 1.442695, %v209_v4  ;;  %v213_v7 = vmul.f32 1.442695, %v210_v5 }
 0x1b4   :  { %379 = vpow2.f32 %v211_v6 }
 0x1b5   :  { %381 = vpow2.f32 %v213_v7 }
 0x1ba   :  { %v380_v8 = vpop.eup %379 }
 0x1bb   :  { %v382_v9 = vpop.eup %381  ;;  %218 = vperm.xlu1 %373, %v380_v8  }
 0x1bc   :  { %221 = vperm.xlu2 %374, %v382_v9  }
 0x216   :  { %v222_v10 = vpop.permute.xlu2 %221 }
 0x217   :  { %v224_v12 = vperm.slane %v222_v10, %v597_v56 }
 0x22d   :  { %v219_v11 = vpop.permute.xlu1 %218 }
 0x22e   :  { %v223_v13 = vperm.slane %v219_v11, %v597_v56 }
 0x230   :  { %v225_v14 = vsel %vm197_vm0, %v224_v12, %v223_v13 }
 0x231   :  { %v227_v15 = vsel %vm200_vm1, %v225_v14, 0.0 }
 0x232   :  { %228 = vadd.xlane.f32.xlu2 %v227_v15 }
 0x2a5   :  { %v229_v16 = vpop.xlane.xlu2 %228 }
 0x2a6   :  { %v231_v17 = vperm.slane %v229_v16, 0  ;;  %v232_v18 = vperm.slane %v229_v16, 1 }
 0x2a8   :  { %383 = vrcp.f32 %v231_v17  ;;  %v246_v25 = vand.u32 2147483648, %v231_v17  ;;  %v261_v26 = vand.u32 2147483648, %v232_v18  ;;  %v244_v28 = vand.u32 2147483647, %v231_v17 }
 0x2a9   :  { %385 = vrcp.f32 %v232_v18  ;;  %v259_v30 = vand.u32 2147483647, %v232_v18  ;;  %vm240_vm4 = vweird.f32 %v231_v17  ;;  %vm255_vm5 = vweird.f32 %v232_v18 }
 0x2aa   :  { %v247_v33 = vor.u32 1.1754944e-38, %v246_v25  ;;  %v262_v34 = vor.u32 1.1754944e-38, %v261_v26  ;;  %vm245_vm8 = vcmp.eq.f32.partialorder %v244_v28, 8.507059e+37 }
 0x2ab   :  { %vm260_vm9 = vcmp.eq.f32.partialorder %v259_v30, 8.507059e+37 }
 0x2ae   :  { %v384_v19 = vpop.eup %383 }
 0x2af   :  { %v386_v20 = vpop.eup %385  ;;  %v236_v21 = vmul.f32 %v384_v19, %v231_v17  ;;  %vm241_vm2 = vweird.f32 %v384_v19 }
 0x2b0   :  { %v251_v22 = vmul.f32 %v386_v20, %v232_v18  ;;  %vm256_vm3 = vweird.f32 %v386_v20  ;;  %vm242_vm6 = vmor %vm240_vm4, %vm241_vm2 }
 0x2b1   :  { %v237_v23 = vsub.f32 1.0, %v236_v21  ;;  %vm257_vm7 = vmor %vm255_vm5, %vm256_vm3 }
 0x2b2   :  { %v252_v24 = vsub.f32 1.0, %v251_v22 }
 0x2b3   :  { %v238_v27 = vmul.f32 %v384_v19, %v237_v23 }
 0x2b4   :  { %v253_v29 = vmul.f32 %v386_v20, %v252_v24 }
 0x2b5   :  { %v239_v31 = vadd.f32 %v384_v19, %v238_v27 }
 0x2b6   :  { %v254_v32 = vadd.f32 %v386_v20, %v253_v29 }
 0x2b7   :  { %v243_v35 = vsel %vm242_vm6, %v384_v19, %v239_v31 }
 0x2b8   :  { %v258_v36 = vsel %vm257_vm7, %v386_v20, %v254_v32  ;;  %v248_v37 = vsel %vm245_vm8, %v247_v33, %v243_v35 }
 0x2b9   :  { %v263_v38 = vsel %vm260_vm9, %v262_v34, %v258_v36  ;;  %v249_v39 = vmul.f32 %v380_v8, %v248_v37 }
 0x2ba   :  { %v264_v40 = vmul.f32 %v382_v9, %v263_v38 }
 0x2bb   :  { %267 = vperm.xlu1 %373, %v249_v39  }
 0x2bc   :  { %295 = vperm.xlu0 %375, %v264_v40  }
 0x32d   :  { %v268_v41 = vpop.permute.xlu1 %267 }
 0x32e   :  { %v296_v42 = vpop.permute.xlu0 %295  ;;  %v269_v43 = vperm.slane %v268_v41, %v597_v56 }
 0x32f   :  { %v297_v44 = vperm.slane %v296_v42, %v597_v56 }
 0x330   :  { %363 = vmatmul.msk.f32.vlgmr.msra.gmra.mxu2 %vm270_vm10, %v269_v43 }
 0x331   :  { %v326_v45 = vsel %vm197_vm0, %v297_v44, %v269_v43  ;;  %364 = vmatmul.msk.f32.vlgmr.msra.gmra.mxu3 %vm270_vm10, %v297_v44 }
 0x332   :  { %328 = vst.msk [vmem:[#allocation10] sm:$0x3] %vm200_vm1, %v326_v45 }
 0x333   :  { %350 = dma.vmem_to_hbm [thread:$0]  %s346_s7, 32, %s348_s11, [#allocation11]  }
 0x3b3   :  { %v290_v48 = vpop.f32.mrf.mxu2 }
 0x3b4   :  { %v317_v46 = vpop.f32.mrf.mxu3 }
 0x3b5   :  { %v322_v47 = vrot.slane %v317_v46, 7 }
 0x3b7   :  { %v323_v49 = vsel %vm197_vm0, %v322_v47, %v290_v48 }
 0x3b8   :  { %325 = vst [vmem:[#allocation9] sm:$0x3] %v323_v49 }
 0x3b9   :  { %339 = dma.vmem_to_hbm [thread:$0]  %s335_s13, 32, %s337_s16, [#allocation5]  }
 0x3ba   :  { %511 = dma.done.wait [#allocation5], 32  }
 0x3bb   :  { %512 = vsyncadd [#allocation5], 4294967264 }
 0x3bc   :  { %513 = dma.done.wait [#allocation11], 32  }
 0x3bd   :  { %514 = vsyncadd [#allocation11], 4294967264 }
 0x3be   :  { %359 = vsyncpa [#allocation4], 1 }
 0x3bf   :  { %360 = vsyncpa [#allocation7], 1 }
 0x3c0   :  { %361 = vsyncpa [#allocation5], 1 }
 0x3c1   :  { %362 = vsyncpa [#allocation11], 1 }

</bundles_post_ra>
